<compile_context>
chip_gen: v6e
topology: v6e:2x2x1
jax: 0.10.0
libtpu: 0.0.40
codegen_flags: <defaults>
</compile_context>

<pallas_src>
import math
import jax
import jax.numpy as jnp
from jax import lax
from jax.experimental import pallas as pl
from jax.experimental.pallas import tpu as pltpu

_INV_SQRT2 = 0.7071067811865476


def _ff_kernel(x_ref, w1v_ref, w1g_ref, b1v_ref, b1g_ref, w2_ref, b2_ref,
               o_ref, acc_ref):
    k = pl.program_id(1)

    @pl.when(k == 0)
    def _():
        acc_ref[...] = jnp.zeros_like(acc_ref)

    x = x_ref[...]
    # First linear: value and gate halves computed separately (GEGLU chunk on
    # the last dim), f32 accumulation on the MXU.
    val = jnp.dot(x, w1v_ref[...], preferred_element_type=jnp.float32) + b1v_ref[...]
    gate = jnp.dot(x, w1g_ref[...], preferred_element_type=jnp.float32) + b1g_ref[...]
    # Exact-erf GELU (matches torch.nn.functional.gelu default).
    gelu_gate = 0.5 * gate * (1.0 + lax.erf(gate * _INV_SQRT2))
    g = val * gelu_gate
    # Second linear, accumulated over hidden tiles. Cast to the weight dtype so
    # bf16 weights hit the fast MXU path while accumulation stays f32.
    acc_ref[...] += jnp.dot(g.astype(w2_ref.dtype), w2_ref[...],
                            preferred_element_type=jnp.float32)

    @pl.when(k == pl.num_programs(1) - 1)
    def _():
        # Dropout(p=0.0) is identity -> just add bias and store.
        o_ref[...] = (acc_ref[...] + b2_ref[...]).astype(o_ref.dtype)


def _round_up(a, b):
    return (a + b - 1) // b * b


def feed_forward(x, w1, b1, w2, b2, *, tm=256, th=512):
    """x: (..., dim). w1: (dim, 2*hidden), b1: (2*hidden,), w2: (hidden, dim),
    b2: (dim,). Returns same shape/dtype as x."""
    orig_shape = x.shape
    dim = orig_shape[-1]
    x2 = x.reshape(-1, dim)
    m = x2.shape[0]
    two_hidden = w1.shape[1]
    hidden = w2.shape[0]
    assert two_hidden == 2 * hidden

    # Split first linear into GEGLU value / gate halves (static column slices
    # of the weight, done once at trace time — no in-kernel slicing of a
    # materialized (TM, 2*hidden) intermediate).
    w1_val = w1[:, :hidden]
    w1_gate = w1[:, hidden:]
    b1_val = b1[:hidden].reshape(1, hidden)
    b1_gate = b1[hidden:].reshape(1, hidden)
    b2_2d = b2.reshape(1, dim)

    # Row tile: big enough to feed the MXU, multiple of 8; pad rows instead of
    # asserting divisibility.
    tm = max(8, min(_round_up(tm, 8), _round_up(m, 8)))
    m_pad = _round_up(m, tm)
    if m_pad != m:
        x2 = jnp.pad(x2, ((0, m_pad - m), (0, 0)))

    # Hidden tile: must divide hidden evenly (fallback: process all of hidden
    # in one step, e.g. the small test case).
    th = min(th, hidden)
    if hidden % th != 0:
        th = hidden
    n_k = hidden // th

    cost = pl.CostEstimate(
        flops=2 * m_pad * dim * two_hidden + 2 * m_pad * hidden * dim,
        transcendentals=m_pad * hidden,
        bytes_accessed=int(
            (x2.size + w1.size + b1.size + w2.size + b2.size + m_pad * dim)
            * jnp.dtype(x.dtype).itemsize),
    )

    out = pl.pallas_call(
        _ff_kernel,
        out_shape=jax.ShapeDtypeStruct((m_pad, dim), x.dtype),
        grid_spec=pltpu.PrefetchScalarGridSpec(
            num_scalar_prefetch=0,
            grid=(m_pad // tm, n_k),
            in_specs=[
                pl.BlockSpec((tm, dim), lambda i, k: (i, 0)),   # x row tile
                pl.BlockSpec((dim, th), lambda i, k: (0, k)),   # w1 value half
                pl.BlockSpec((dim, th), lambda i, k: (0, k)),   # w1 gate half
                pl.BlockSpec((1, th), lambda i, k: (0, k)),     # b1 value half
                pl.BlockSpec((1, th), lambda i, k: (0, k)),     # b1 gate half
                pl.BlockSpec((th, dim), lambda i, k: (k, 0)),   # w2 tile
                pl.BlockSpec((1, dim), lambda i, k: (0, 0)),    # b2
            ],
            out_specs=pl.BlockSpec((tm, dim), lambda i, k: (i, 0)),
            scratch_shapes=[pltpu.VMEM((tm, dim), jnp.float32)],
        ),
        compiler_params=pltpu.CompilerParams(
            dimension_semantics=("parallel", "arbitrary"),
        ),
        cost_estimate=cost,
    )(x2, w1_val, w1_gate, b1_val, b1_gate, w2, b2_2d)

    if m_pad != m:
        out = out[:m]
    return out.reshape(orig_shape)


def init_params(key, dim, mult=4, dtype=jnp.float32):
    """Deterministic init mimicking nn.Linear default (uniform +/- 1/sqrt(fan_in))."""
    hidden = dim * mult
    k1, k2, k3, k4 = jax.random.split(key, 4)
    bound1 = 1.0 / math.sqrt(dim)
    bound2 = 1.0 / math.sqrt(hidden)
    w1 = jax.random.uniform(k1, (dim, 2 * hidden), dtype, -bound1, bound1)
    b1 = jax.random.uniform(k2, (2 * hidden,), dtype, -bound1, bound1)
    w2 = jax.random.uniform(k3, (hidden, dim), dtype, -bound2, bound2)
    b2 = jax.random.uniform(k4, (dim,), dtype, -bound2, bound2)
    return w1, b1, w2, b2


def feed_forward_ref(x, w1, b1, w2, b2):
    h = x @ w1 + b1
    hid = w2.shape[0]
    val, gate = h[..., :hid], h[..., hid:]
    g = val * jax.nn.gelu(gate, approximate=False)
    return g @ w2 + b2


if __name__ == "__main__":
    key = jax.random.PRNGKey(0)
    kx, kp = jax.random.split(key)

    batch, seq, dim, mult = 2, 8, 32, 4
    x = jax.random.normal(kx, (batch, seq, dim), jnp.float32)
    w1, b1, w2, b2 = init_params(kp, dim, mult)

    out = feed_forward(x, w1, b1, w2, b2)
    out = jax.block_until_ready(out)
    ref = feed_forward_ref(x, w1, b1, w2, b2)
    assert out.shape == x.shape
    assert jnp.allclose(out, ref, atol=1e-5, rtol=1e-5)

    # Exercise the row-padding path (rows not a multiple of the row tile).
    x_odd = jax.random.normal(kx, (3, 7, dim), jnp.float32)
    out_odd = jax.block_until_ready(feed_forward(x_odd, w1, b1, w2, b2))
    ref_odd = feed_forward_ref(x_odd, w1, b1, w2, b2)
    assert out_odd.shape == x_odd.shape
    assert jnp.allclose(out_odd, ref_odd, atol=1e-5, rtol=1e-5)

    print("KERNEL_OK")
</pallas_src>

<mosaic_0001>
module attributes {stable_mosaic.version = 11 : i64} {
  func.func @_ff_kernel(%arg0: i32, %arg1: i32, %arg2: memref<16x32xf32, #tpu.memory_space<vmem>>, %arg3: memref<32x128xf32, #tpu.memory_space<vmem>>, %arg4: memref<32x128xf32, #tpu.memory_space<vmem>>, %arg5: memref<1x128xf32, #tpu.memory_space<vmem>>, %arg6: memref<1x128xf32, #tpu.memory_space<vmem>>, %arg7: memref<128x32xf32, #tpu.memory_space<vmem>>, %arg8: memref<1x32xf32, #tpu.memory_space<vmem>>, %arg9: memref<16x32xf32, #tpu.memory_space<vmem>>, %arg10: memref<16x32xf32, #tpu.memory_space<vmem>>) attributes {dimension_semantics = [#tpu.dimension_semantics<parallel>, #tpu.dimension_semantics<arbitrary>], iteration_bounds = array<i64: 1, 1>, scalar_prefetch = 0 : i64, scratch_operands = 1 : i64, tpu.core_type = #tpu.core_type<tc>, window_params = [{transform_indices = @transform_0, window_bounds = array<i64: 16, 32>}, {transform_indices = @transform_1, window_bounds = array<i64: 32, 128>}, {transform_indices = @transform_2, window_bounds = array<i64: 32, 128>}, {transform_indices = @transform_3, window_bounds = array<i64: 1, 128>}, {transform_indices = @transform_4, window_bounds = array<i64: 1, 128>}, {transform_indices = @transform_5, window_bounds = array<i64: 128, 32>}, {pipeline_mode = #tpu.pipeline_mode<synchronous>, transform_indices = @transform_6, window_bounds = array<i64: 1, 32>}, {transform_indices = @transform_7, window_bounds = array<i64: 16, 32>}]} {
    %c0_i32 = arith.constant 0 : i32
    %0 = arith.cmpi eq, %arg1, %c0_i32 : i32
    %1 = arith.extui %0 : i1 to i32
    %c0_i32_0 = arith.constant 0 : i32
    %2 = arith.cmpi ne, %1, %c0_i32_0 : i32
    scf.if %2 {
      %cst_23 = arith.constant 0.000000e+00 : f32
      %31 = vector.broadcast %cst_23 : f32 to vector<16x32xf32>
      %c0_24 = arith.constant 0 : index
      %c0_25 = arith.constant 0 : index
      %32 = vector.load %arg10[%c0_24, %c0_25] : memref<16x32xf32, #tpu.memory_space<vmem>>, vector<16x32xf32>
      tpu.vector_store %arg10[%c0_24, %c0_25], %31 {strides = array<i32>} : memref<16x32xf32, #tpu.memory_space<vmem>>, vector<16x32xf32>,
    } else {
    }
    %c0 = arith.constant 0 : index
    %c0_1 = arith.constant 0 : index
    %3 = vector.load %arg2[%c0, %c0_1] : memref<16x32xf32, #tpu.memory_space<vmem>>, vector<16x32xf32>
    %c0_2 = arith.constant 0 : index
    %c0_3 = arith.constant 0 : index
    %4 = vector.load %arg3[%c0_2, %c0_3] : memref<32x128xf32, #tpu.memory_space<vmem>>, vector<32x128xf32>
    %cst = arith.constant dense<0.000000e+00> : vector<16x128xf32>
    %5 = tpu.matmul %3, %4, %cst {dimension_numbers = #tpu.dot_dimension_numbers<[1], [0], [0], [1], [0, 0, 1, 1], [], []>} : vector<16x32xf32>, vector<32x128xf32>, vector<16x128xf32> -> vector<16x128xf32>
    %c0_4 = arith.constant 0 : index
    %c0_5 = arith.constant 0 : index
    %6 = vector.load %arg5[%c0_4, %c0_5] : memref<1x128xf32, #tpu.memory_space<vmem>>, vector<1x128xf32>
    %7 = vector.broadcast %6 : vector<1x128xf32> to vector<16x128xf32>
    %8 = arith.addf %5, %7 : vector<16x128xf32>
    %c0_6 = arith.constant 0 : index
    %c0_7 = arith.constant 0 : index
    %9 = vector.load %arg4[%c0_6, %c0_7] : memref<32x128xf32, #tpu.memory_space<vmem>>, vector<32x128xf32>
    %cst_8 = arith.constant dense<0.000000e+00> : vector<16x128xf32>
    %10 = tpu.matmul %3, %9, %cst_8 {dimension_numbers = #tpu.dot_dimension_numbers<[1], [0], [0], [1], [0, 0, 1, 1], [], []>} : vector<16x32xf32>, vector<32x128xf32>, vector<16x128xf32> -> vector<16x128xf32>
    %c0_9 = arith.constant 0 : index
    %c0_10 = arith.constant 0 : index
    %11 = vector.load %arg6[%c0_9, %c0_10] : memref<1x128xf32, #tpu.memory_space<vmem>>, vector<1x128xf32>
    %12 = vector.broadcast %11 : vector<1x128xf32> to vector<16x128xf32>
    %13 = arith.addf %10, %12 : vector<16x128xf32>
    %cst_11 = arith.constant 5.000000e-01 : f32
    %14 = vector.broadcast %cst_11 : f32 to vector<16x128xf32>
    %15 = arith.mulf %14, %13 : vector<16x128xf32>
    %cst_12 = arith.constant 0.707106769 : f32
    %16 = vector.broadcast %cst_12 : f32 to vector<16x128xf32>
    %17 = arith.mulf %13, %16 : vector<16x128xf32>
    %18 = math.erf %17 : vector<16x128xf32>
    %cst_13 = arith.constant 1.000000e+00 : f32
    %19 = vector.broadcast %cst_13 : f32 to vector<16x128xf32>
    %20 = arith.addf %19, %18 : vector<16x128xf32>
    %21 = arith.mulf %15, %20 : vector<16x128xf32>
    %22 = arith.mulf %8, %21 : vector<16x128xf32>
    %c0_14 = arith.constant 0 : index
    %c0_15 = arith.constant 0 : index
    %23 = vector.load %arg10[%c0_14, %c0_15] : memref<16x32xf32, #tpu.memory_space<vmem>>, vector<16x32xf32>
    %c0_16 = arith.constant 0 : index
    %c0_17 = arith.constant 0 : index
    %24 = vector.load %arg7[%c0_16, %c0_17] : memref<128x32xf32, #tpu.memory_space<vmem>>, vector<128x32xf32>
    %cst_18 = arith.constant dense<0.000000e+00> : vector<16x32xf32>
    %25 = tpu.matmul %22, %24, %cst_18 {dimension_numbers = #tpu.dot_dimension_numbers<[1], [0], [0], [1], [0, 0, 1, 1], [], []>} : vector<16x128xf32>, vector<128x32xf32>, vector<16x32xf32> -> vector<16x32xf32>
    %26 = arith.addf %23, %25 : vector<16x32xf32>
    %c0_19 = arith.constant 0 : index
    %c0_20 = arith.constant 0 : index
    %27 = vector.load %arg10[%c0_19, %c0_20] : memref<16x32xf32, #tpu.memory_space<vmem>>, vector<16x32xf32>
    tpu.vector_store %arg10[%c0_19, %c0_20], %26 {strides = array<i32>} : memref<16x32xf32, #tpu.memory_space<vmem>>, vector<16x32xf32>,
    %c0_i32_21 = arith.constant 0 : i32
    %28 = arith.cmpi eq, %arg1, %c0_i32_21 : i32
    %29 = arith.extui %28 : i1 to i32
    %c0_i32_22 = arith.constant 0 : i32
    %30 = arith.cmpi ne, %29, %c0_i32_22 : i32
    scf.if %30 {
      %c0_23 = arith.constant 0 : index
      %c0_24 = arith.constant 0 : index
      %31 = vector.load %arg10[%c0_23, %c0_24] : memref<16x32xf32, #tpu.memory_space<vmem>>, vector<16x32xf32>
      %c0_25 = arith.constant 0 : index
      %c0_26 = arith.constant 0 : index
      %32 = vector.load %arg8[%c0_25, %c0_26] : memref<1x32xf32, #tpu.memory_space<vmem>>, vector<1x32xf32>
      %33 = vector.broadcast %32 : vector<1x32xf32> to vector<16x32xf32>
      %34 = arith.addf %31, %33 : vector<16x32xf32>
      %c0_27 = arith.constant 0 : index
      %c0_28 = arith.constant 0 : index
      %35 = vector.load %arg9[%c0_27, %c0_28] : memref<16x32xf32, #tpu.memory_space<vmem>>, vector<16x32xf32>
      tpu.vector_store %arg9[%c0_27, %c0_28], %34 {strides = array<i32>} : memref<16x32xf32, #tpu.memory_space<vmem>>, vector<16x32xf32>,
    } else {
    }
    return
  }
  func.func @transform_0(%arg0: i32, %arg1: i32) -> (i32, i32) {
    %c0_i32 = arith.constant 0 : i32
    %c0_i32_0 = arith.constant 0 : i32
    return %arg0, %c0_i32 : i32, i32
  }
  func.func @transform_1(%arg0: i32, %arg1: i32) -> (i32, i32) {
    %c0_i32 = arith.constant 0 : i32
    %c0_i32_0 = arith.constant 0 : i32
    return %c0_i32, %arg1 : i32, i32
  }
  func.func @transform_2(%arg0: i32, %arg1: i32) -> (i32, i32) {
    %c0_i32 = arith.constant 0 : i32
    %c0_i32_0 = arith.constant 0 : i32
    return %c0_i32, %arg1 : i32, i32
  }
  func.func @transform_3(%arg0: i32, %arg1: i32) -> (i32, i32) {
    %c0_i32 = arith.constant 0 : i32
    %c0_i32_0 = arith.constant 0 : i32
    return %c0_i32, %arg1 : i32, i32
  }
  func.func @transform_4(%arg0: i32, %arg1: i32) -> (i32, i32) {
    %c0_i32 = arith.constant 0 : i32
    %c0_i32_0 = arith.constant 0 : i32
    return %c0_i32, %arg1 : i32, i32
  }
  func.func @transform_5(%arg0: i32, %arg1: i32) -> (i32, i32) {
    %c0_i32 = arith.constant 0 : i32
    %c0_i32_0 = arith.constant 0 : i32
    return %arg1, %c0_i32 : i32, i32
  }
  func.func @transform_6(%arg0: i32, %arg1: i32) -> (i32, i32) {
    %c0_i32 = arith.constant 0 : i32
    %c0_i32_0 = arith.constant 0 : i32
    %c0_i32_1 = arith.constant 0 : i32
    return %c0_i32, %c0_i32_0 : i32, i32
  }
  func.func @transform_7(%arg0: i32, %arg1: i32) -> (i32, i32) {
    %c0_i32 = arith.constant 0 : i32
    %c0_i32_0 = arith.constant 0 : i32
    return %arg0, %c0_i32 : i32, i32
  }
}

</mosaic_0001>

<bundles_post_ra>
// kernel: tpu_custom_call.1
= control target key start
LH: loop header
LB: loop body
LE: loop exit
PB: predicated region body
PF: predicated region fallthrough
CT: control target
= control target key end

     0   :  { %vm31_vm0 = vcmask 261120   ;;  %s624_s0 = inlined_call_operand.vmem [shape: f32[16,32], index: 0, kind: input, shape index: {}]   ;;  %s625_s1 = inlined_call_operand.vmem [shape: f32[32,128], index: 1, kind: input, shape index: {}]   ;;  %s626_s2 = inlined_call_operand.vmem [shape: f32[32,128], index: 2, kind: input, shape index: {}]   ;;  %s627_s3 = inlined_call_operand.vmem [shape: f32[1,128], index: 3, kind: input, shape index: {}]   ;;  %s628_s4 = inlined_call_operand.vmem [shape: f32[1,128], index: 4, kind: input, shape index: {}]   ;;  %s629_s5 = inlined_call_operand.vmem [shape: f32[128,32], index: 5, kind: input, shape index: {}]   ;;  %s630_s6 = inlined_call_operand.vmem [shape: f32[1,32], index: 6, kind: input, shape index: {}]   ;;  %s631_s7 = inlined_call_operand.hbm [shape: f32[16,32], index: 7, kind: output, shape index: {}]  }
   0x1   :  { %v39_v0 = vld [vmem:[%s625_s1 + $0x18] sm:$0xff]  ;;  %v38_v1 = vld [vmem:[%s625_s1 + $0x10] sm:$0xff]  ;;  %v34_v2 = vld [vmem:[%s624_s0] sm:$0xff] }
   0x2   :  { %393 = vmatprep.subr.mxu1 %v39_v0  ;;  %v37_v3 = vld [vmem:[%s625_s1 + $0x8] sm:$0xff]  ;;  %401 = vmatprep.mubr.msk.f32.mxu1 %vm31_vm0, %v34_v2 }
   0x3   :  { %394 = vmatpush3.msra.mxu1 %v39_v0 }
   0x4   :  { %395 = vmatprep.subr.mxu1 %v38_v1 }
   0x5   :  { %12 = vsyncpa [#allocation4], 0  ;;  %396 = vmatpush3.msra.mxu1 %v38_v1  ;;  %v36_v4 = vld [vmem:[%s625_s1] sm:$0xff]  ;;  %v35_v5 = vld [vmem:[%s624_s0 + $0x8] sm:$0xff]  ;;  %v480_v26 = vmov 0.0   ;;  %s481_s27 = smov [#allocation3]  }
   0x6   :  { %397 = vmatprep.subr.mxu1 %v37_v3  ;;  %v132_v6 = vld [vmem:[%s626_s2 + $0x18] sm:$0xff]  ;;  %v131_v7 = vld [vmem:[%s626_s2 + $0x10] sm:$0xff]  ;;  %v130_v8 = vld [vmem:[%s626_s2 + $0x8] sm:$0xff]  ;;  %33 = vst.msk [vmem:[#allocation2 + $0x8] sm:$0xff] %vm31_vm0, %v480_v26  ;;  %s345_s28 = sshll.u32 %s481_s27, 4  ;;  %s346_s28 = int_to_ptr.vmem [resolvable:$true] %s345_s28 }
   0x7   :  { %398 = vmatpush3.msra.mxu1 %v37_v3  ;;  %v129_v9 = vld [vmem:[%s626_s2] sm:$0xff]  ;;  %v244_v10 = vld [vmem:[%s629_s5 + $0x78] sm:$0xff]  ;;  %v243_v11 = vld [vmem:[%s629_s5 + $0x70] sm:$0xff]  ;;  %32 = vst.msk [vmem:[#allocation2] sm:$0xff] %vm31_vm0, %v480_v26  ;;  %s458_s29 = scalar_lea.vmem %s346_s28, 256  ;;  %p463_p1 = scmp.lt.s32.totalorder %s346_s28, %s346_s28 }
   0x8   :  { %399 = vmatprep.subr.mxu1 %v36_v4  ;;  %415 = vmatprep.subr.mxu0 %v244_v10  ;;  %v242_v12 = vld [vmem:[%s629_s5 + $0x68] sm:$0xff]  ;;  %v241_v13 = vld [vmem:[%s629_s5 + $0x60] sm:$0xff]  ;;  %v240_v14 = vld [vmem:[%s629_s5 + $0x58] sm:$0xff]  ;;  %p459_p0 = scmp.ne.s32.totalorder %s346_s28, %s458_s29  ;;  %p464_p2 = scmp.lt.s32.totalorder %s458_s29, %s458_s29 }
   0x9   :  { %400 = vmatpush3.msra.mxu1 %v36_v4  ;;  %416 = vmatpush3.msra.mxu0 %v244_v10  ;;  %v239_v15 = vld [vmem:[%s629_s5 + $0x50] sm:$0xff]  ;;  %v238_v16 = vld [vmem:[%s629_s5 + $0x48] sm:$0xff]  ;;  %v237_v17 = vld [vmem:[%s629_s5 + $0x40] sm:$0xff] }
   0xa   :  { %402 = vmatmul.mubr.msk.f32.vlgmr.msra.gmra.mxu1 %vm31_vm0, %v35_v5  ;;  %404 = vmatprep.subr.mxu1 %v132_v6  ;;  %v236_v18 = vld [vmem:[%s629_s5 + $0x38] sm:$0xff]  ;;  %v235_v19 = vld [vmem:[%s629_s5 + $0x30] sm:$0xff]  ;;  %v234_v20 = vld [vmem:[%s629_s5 + $0x28] sm:$0xff]  ;;  %p465_p3 = por %p464_p2, %p463_p1 }
   0xb   :  { %405 = vmatpush3.msra.mxu1 %v132_v6  ;;  %412 = vmatprep.mubr.msk.f32.mxu1 %vm31_vm0, %v34_v2  ;;  %v233_v21 = vld [vmem:[%s629_s5 + $0x20] sm:$0xff]  ;;  %v232_v22 = vld [vmem:[%s629_s5 + $0x18] sm:$0xff]  ;;  %v231_v23 = vld [vmem:[%s629_s5 + $0x10] sm:$0xff] }
   0xc   :  { %406 = vmatprep.subr.mxu1 %v131_v7  ;;  %417 = vmatprep.subr.mxu0 %v243_v11  ;;  %v230_v24 = vld [vmem:[%s629_s5 + $0x8] sm:$0xff]  ;;  %v229_v25 = vld [vmem:[%s629_s5] sm:$0xff]  ;;  %p466_p4 = pnand %p465_p3, %p459_p0 }
   0xd   :  { %407 = vmatpush3.msra.mxu1 %v131_v7  ;;  %418 = vmatpush3.msra.mxu0 %v243_v11  ;;  %v359_v29 = vld [vmem:[%s628_s4] ss:$0 sm:$0xff]  ;;  %v228_v49 = vld [vmem:[#allocation2 + $0x8] sm:$0xff] }
   0xe   :  { %408 = vmatprep.subr.mxu1 %v130_v8  ;;  %419 = vmatprep.subr.mxu0 %v242_v12  ;;  %v356_v39 = vld [vmem:[%s627_s3] ss:$0 sm:$0xff] }
   0xf   :  { %409 = vmatpush3.msra.mxu1 %v130_v8  ;;  %420 = vmatpush3.msra.mxu0 %v242_v12  ;;  %v227_v51 = vld [vmem:[#allocation2] sm:$0xff] }
  0x10   :  { %410 = vmatprep.subr.mxu1 %v129_v9  ;;  %421 = vmatprep.subr.mxu0 %v241_v13  ;;  %v362_v55 = vld [vmem:[%s630_s6] ss:$0 sm:$0xff] }
  0x11   :  { %411 = vmatpush3.msra.mxu1 %v129_v9  ;;  %422 = vmatpush3.msra.mxu0 %v241_v13 }
  0x12   :  { %413 = vmatmul.mubr.msk.f32.vlgmr.msra.gmra.mxu1 %vm31_vm0, %v35_v5  ;;  %423 = vmatprep.subr.mxu0 %v240_v14 }
  0x13   :  { %424 = vmatpush3.msra.mxu0 %v240_v14 }
  0x14   :  { %425 = vmatprep.subr.mxu0 %v239_v15 }
  0x15   :  { %426 = vmatpush3.msra.mxu0 %v239_v15 }
  0x16   :  { %427 = vmatprep.subr.mxu0 %v238_v16 }
  0x17   :  { %428 = vmatpush3.msra.mxu0 %v238_v16 }
  0x18   :  { %429 = vmatprep.subr.mxu0 %v237_v17 }
  0x19   :  { %430 = vmatpush3.msra.mxu0 %v237_v17 }
  0x1a   :  { %431 = vmatprep.subr.mxu0 %v236_v18 }
  0x1b   :  { %432 = vmatpush3.msra.mxu0 %v236_v18 }
  0x1c   :  { %433 = vmatprep.subr.mxu0 %v235_v19 }
  0x1d   :  { %434 = vmatpush3.msra.mxu0 %v235_v19 }
  0x1e   :  { %435 = vmatprep.subr.mxu0 %v234_v20 }
  0x1f   :  { %436 = vmatpush3.msra.mxu0 %v234_v20 }
  0x20   :  { %437 = vmatprep.subr.mxu0 %v233_v21 }
  0x21   :  { %438 = vmatpush3.msra.mxu0 %v233_v21 }
  0x22   :  { %439 = vmatprep.subr.mxu0 %v232_v22 }
  0x23   :  { %440 = vmatpush3.msra.mxu0 %v232_v22 }
  0x24   :  { %441 = vmatprep.subr.mxu0 %v231_v23 }
  0x25   :  { %442 = vmatpush3.msra.mxu0 %v231_v23 }
  0x26   :  { %443 = vmatprep.subr.mxu0 %v230_v24 }
  0x27   :  { %444 = vmatpush3.msra.mxu0 %v230_v24 }
  0x28   :  { %445 = vmatprep.subr.mxu0 %v229_v25 }
  0x29   :  { %446 = vmatpush3.msra.mxu0 %v229_v25 }
  0xca   :  { %v403_v27 = vpop.f32.mrf.mxu1 }
  0xcb   :  { %v126_v46 = vadd.f32 %v403_v27, %v356_v39 }
  0xcc   :  { %v120_v28 = vpop.f32.mrf.mxu1 }
  0xcd   :  { %v121_v44 = vadd.f32 %v356_v39, %v120_v28 }
  0xd2   :  { %v414_v30 = vpop.f32.mrf.mxu1 }
  0xd3   :  { %v212_v31 = vadd.f32 %v414_v30, %v359_v29 }
  0xd4   :  { %v206_v32 = vpop.f32.mrf.mxu1 }
  0xd5   :  { %v218_v33 = vmul.f32 0.70710677, %v212_v31  ;;  %v207_v34 = vadd.f32 %v359_v29, %v206_v32  ;;  %v216_v40 = vmul.f32 0.5, %v212_v31 }
  0xd7   :  { %454 = verf.f32 %v218_v33  ;;  %v217_v35 = vmul.f32 0.70710677, %v207_v34  ;;  %v215_v41 = vmul.f32 0.5, %v207_v34 }
  0xd9   :  { %456 = verf.f32 %v217_v35 }
  0xe4   :  { %v455_v36 = vpop.eup %454 }
  0xe5   :  { %v222_v37 = vadd.f32 1.0, %v455_v36 }
  0xe6   :  { %v457_v38 = vpop.eup %456 }
  0xe7   :  { %v221_v42 = vadd.f32 1.0, %v457_v38  ;;  %v224_v43 = vmul.f32 %v222_v37, %v216_v40 }
  0xe9   :  { %v223_v45 = vmul.f32 %v221_v42, %v215_v41  ;;  %v226_v48 = vmul.f32 %v224_v43, %v126_v46 }
  0xeb   :  { %v225_v47 = vmul.f32 %v223_v45, %v121_v44 }
  0xed   :  { %447 = vmatprep.mubr.f32.mxu0 %v225_v47 }
  0xee   :  { %448 = vmatmul.mubr.f32.vlgmr.msra.gmra.mxu0 %v226_v48 }
 0x1ae   :  { %v449_v50 = vpop.f32.mrf.mxu0 }
 0x1af   :  { %v321_v52 = vadd.f32 %v449_v50, %v228_v49 }
 0x1b0   :  { %v311_v53 = vpop.f32.mrf.mxu0 }
 0x1b1   :  { %323 = vst.msk [vmem:[#allocation2 + $0x8] sm:$0xff] %vm31_vm0, %v321_v52  ;;  %v320_v54 = vadd.f32 %v311_v53, %v227_v51 }
 0x1b3   :  { %322 = vst.msk [vmem:[#allocation2] sm:$0xff] %vm31_vm0, %v320_v54 }
 0x1b8   :  { %v328_v56 = vld [vmem:[#allocation2 + $0x8] sm:$0xff] }
 0x1b9   :  { %v337_v57 = vadd.f32 %v362_v55, %v328_v56 }
 0x1ba   :  { %v327_v58 = vld [vmem:[#allocation2] sm:$0xff] }
 0x1bb   :  { %v336_v59 = vadd.f32 %v362_v55, %v327_v58  ;;  %339 = vst.msk [vmem:[#allocation3 + $0x8] sm:$0xff] %vm31_vm0, %v337_v57 }
 0x1bd   :  { %338 = vst.msk [vmem:[#allocation3] sm:$0xff] %vm31_vm0, %v336_v59 }
 0x1be   :  { %469 = shalt.err (!%p466_p4)
}
 0x1bf   :  { %s482_s30 = smov 128   ;;  %s483_s6 = smov 8  }
 0x1c0   :  { %351 = dma.vmem_to_hbm [thread:$0]  %s346_s28, 256, %s631_s7, [#allocation4], %s482_s30, %s482_s30, %s483_s6  }
 0x1c1   :  { %478 = dma.done.wait [#allocation4], 256  }
 0x1c2   :  { %479 = vsyncadd [#allocation4], 4294967040 }
 0x1c3   :  { %355 = vsyncpa [#allocation4], 1 }

</bundles_post_ra>
